<compile_context>
chip_gen: v7x
topology: tpu7x:2x2x1
jax: 0.10.0
libtpu: 0.0.40
codegen_flags: <defaults>
</compile_context>

<pallas_src>
import functools

import numpy as np
import jax
import jax.numpy as jnp
from jax.experimental import pallas as pl
from jax.experimental.pallas import tpu as pltpu

NUM_QUBITS = 4
NUM_LAYERS = 2
DIM = 2 ** NUM_QUBITS           # 16 amplitudes
NUM_BLOCKS = 4                  # ['E'->RY, 'RZ', 'E'->RX, 'CNOT']
NUM_OPS_W = 5                   # len(ops) + 1 (sphc_struc non-empty)
NUM_ACTIONS = 4                 # == num_qubits measured


# ----------------------------------------------------------------------------
# Host-side (glue): build the batch-independent fused constants from the
# variational weights.  Parameter setup only; the per-sample hot path runs in
# the Pallas kernel.
# ----------------------------------------------------------------------------
def _rx(t):
    c, s = np.cos(t / 2.0), np.sin(t / 2.0)
    return np.array([[c, -1j * s], [-1j * s, c]], dtype=np.complex128)


def _ry(t):
    c, s = np.cos(t / 2.0), np.sin(t / 2.0)
    return np.array([[c, -s], [s, c]], dtype=np.complex128)


def _rz(t):
    return np.array([[np.exp(-1j * t / 2.0), 0.0],
                     [0.0, np.exp(1j * t / 2.0)]], dtype=np.complex128)


def _single(u, wire, nq):
    full = np.eye(1, dtype=np.complex128)
    for w in range(nq):
        full = np.kron(full, u if w == wire else np.eye(2, dtype=np.complex128))
    return full


def _cnot(control, target, nq):
    dim = 2 ** nq
    m = np.zeros((dim, dim), dtype=np.complex128)
    for i in range(dim):
        cb = (i >> (nq - 1 - control)) & 1
        j = i ^ (cb << (nq - 1 - target))
        m[j, i] = 1.0
    return m


def build_layer_unitaries(theta):
    """theta: (L, Q, NUM_BLOCKS, NUM_OPS_W) float.  Returns (L, DIM, DIM) complex."""
    us = []
    for l in range(NUM_LAYERS):
        u = np.eye(DIM, dtype=np.complex128)
        for w in range(NUM_QUBITS):                       # block 0: RY (sampled op 0)
            u = _single(_ry(theta[l, w, 0, 0]), w, NUM_QUBITS) @ u
        for w in range(NUM_QUBITS):                       # block 1: RZ (fixed, idx 4)
            u = _single(_rz(theta[l, w, 1, NUM_OPS_W - 1]), w, NUM_QUBITS) @ u
        for w in range(NUM_QUBITS):                       # block 2: RX (sampled op 1)
            u = _single(_rx(theta[l, w, 2, 1]), w, NUM_QUBITS) @ u
        for w in range(NUM_QUBITS):                       # block 3: CNOT ring
            u = _cnot(w, (w + 1) % NUM_QUBITS, NUM_QUBITS) @ u
        us.append(u)
    return np.stack(us)


def build_constants(theta):
    """Fused kernel constants.

    Returns:
      w_cat: (2*DIM, DIM) f32 = [Re(U'); Im(U')] with U' = U_L-1 ... U_0 @ D,
             D = diag((-i)^popcount(i))  (RX state-prep phase folded in).
      m2:    (NUM_QUBITS, 2*DIM) f32 measurement matrix with the (1+z)/2 epilogue
             folded in: out[q] = sum_i [bit_q(i)==0] * (re_i^2 + im_i^2).
    """
    us = build_layer_unitaries(theta)
    u_total = np.eye(DIM, dtype=np.complex128)
    for l in range(NUM_LAYERS):                           # layer fusion (no reuploading)
        u_total = us[l] @ u_total
    d = np.array([(-1j) ** bin(i).count("1") for i in range(DIM)], dtype=np.complex128)
    u_prime = u_total * d[None, :]                        # U_total @ diag(d)
    w_cat = np.concatenate([u_prime.real, u_prime.imag], axis=0).astype(np.float32)

    m = np.zeros((NUM_QUBITS, DIM), np.float32)
    for q in range(NUM_QUBITS):
        for i in range(DIM):
            if ((i >> (NUM_QUBITS - 1 - q)) & 1) == 0:    # P(bit_q == 0) == (1+<Z_q>)/2
                m[q, i] = 1.0
    m2 = np.concatenate([m, m], axis=1).astype(np.float32)   # acts on [re^2 ; im^2]
    return jnp.asarray(w_cat), jnp.asarray(m2)


# ----------------------------------------------------------------------------
# Pallas kernel (lane-dense, batch-on-lanes layout):
#   x_ref : (Q, TB)        scaled inputs tile
#   w_ref : (2*DIM, DIM)   fused complex unitary [Re; Im] (resident)
#   m2_ref: (Q, 2*DIM)     fused measurement matrix (resident)
#   out   : (Q, TB)
# ----------------------------------------------------------------------------
def qdqn_kernel(x_ref, w_ref, m2_ref, out_ref):
    tb = x_ref.shape[1]
    half = x_ref[...] * jnp.float32(np.pi * 0.5)          # inputs*pi, /2 for half-angle
    c = jnp.cos(half)                                     # (Q, TB)  one EUP pass
    s = jnp.sin(half)                                     # (Q, TB)  one EUP pass

    # Real magnitudes of the RX-encoded product state (phase folded into w_ref).
    idx = jax.lax.broadcasted_iota(jnp.int32, (DIM, tb), 0)
    mag = jnp.ones((DIM, tb), jnp.float32)
    for w in range(NUM_QUBITS):
        bit = (idx >> (NUM_QUBITS - 1 - w)) & 1           # wire w bit (wire 0 = MSB)
        mag = mag * jnp.where(bit == 0, c[w:w + 1, :], s[w:w + 1, :])

    # Full fused circuit:  [Re(psi); Im(psi)] = W' @ mag   (one MXU dot)
    sri = jnp.dot(w_ref[...], mag, preferred_element_type=jnp.float32)   # (2*DIM, TB)
    sq = sri * sri
    # Measurement + (1+z)/2 epilogue folded:  out = M2 @ [re^2; im^2]
    out_ref[...] = jnp.dot(m2_ref[...], sq, preferred_element_type=jnp.float32)


def _round_up(n, m):
    return ((n + m - 1) // m) * m


@functools.partial(jax.jit, static_argnames=("tile_b", "b_pad"))
def _qdqn_call(x, w_cat, m2, tile_b, b_pad):
    b = x.shape[0]
    x_t = jnp.transpose(x)                                # (Q, B)
    x_t = jnp.pad(x_t, ((0, 0), (0, b_pad - b)))          # padded rows are discarded
    out_t = pl.pallas_call(
        qdqn_kernel,
        out_shape=jax.ShapeDtypeStruct((NUM_QUBITS, b_pad), jnp.float32),
        grid_spec=pltpu.PrefetchScalarGridSpec(
            num_scalar_prefetch=0,
            grid=(b_pad // tile_b,),
            in_specs=[
                pl.BlockSpec((NUM_QUBITS, tile_b), lambda i: (0, i)),
                pl.BlockSpec((2 * DIM, DIM), lambda i: (0, 0)),      # resident
                pl.BlockSpec((NUM_QUBITS, 2 * DIM), lambda i: (0, 0)),  # resident
            ],
            out_specs=pl.BlockSpec((NUM_QUBITS, tile_b), lambda i: (0, i)),
        ),
        compiler_params=pltpu.CompilerParams(
            dimension_semantics=("parallel",)),
    )(x_t, w_cat, m2)
    return jnp.transpose(out_t)[:b]                       # (B, Q)


def qdqn_forward(x, w_cat, m2, tile_b=2048):
    """x: (B, NUM_QUBITS) f32 in the module's native layout -> (B, NUM_QUBITS)."""
    b = x.shape[0]
    tb = min(tile_b, _round_up(max(b, 1), 128))           # lane-aligned batch tile
    b_pad = _round_up(b, tb)
    return _qdqn_call(x, w_cat, m2, tb, b_pad)


# ----------------------------------------------------------------------------
# Pure-numpy reference (independent gate-by-gate statevector simulation)
# ----------------------------------------------------------------------------
def reference_forward(x, theta):
    x = x * np.pi
    layer_us = build_layer_unitaries(theta)
    outs = []
    for b in range(x.shape[0]):
        state = np.zeros(DIM, dtype=np.complex128)
        state[0] = 1.0
        for w in range(NUM_QUBITS):                       # encoding block
            state = _single(_rx(x[b, w]), w, NUM_QUBITS) @ state
        for l in range(NUM_LAYERS):
            state = layer_us[l] @ state
        probs = np.abs(state) ** 2
        expz = []
        for q in range(NUM_QUBITS):
            sign = np.array([1.0 if ((i >> (NUM_QUBITS - 1 - q)) & 1) == 0 else -1.0
                             for i in range(DIM)])
            expz.append(np.sum(probs * sign))
        outs.append((1.0 + np.array(expz)) / 2.0)
    return np.stack(outs).astype(np.float32)


if __name__ == "__main__":
    key = jax.random.PRNGKey(0)
    kx, kt = jax.random.split(key)

    B = 2
    x = jax.random.uniform(kx, (B, NUM_QUBITS), jnp.float32, minval=-1.0, maxval=1.0)

    # Deterministic variational weights (TorchLayer-style U[0, 2pi)).  phi/delta
    # weights exist in the module with the same shape but are unused because the
    # sampled gate set {RY, RZ, RX, CNOT} only consumes theta.
    theta = np.asarray(
        jax.random.uniform(kt, (NUM_LAYERS, NUM_QUBITS, NUM_BLOCKS, NUM_OPS_W),
                           jnp.float32, minval=0.0, maxval=2.0 * np.pi),
        dtype=np.float64)

    w_cat, m2 = build_constants(theta)

    out = qdqn_forward(x, w_cat, m2)
    out = jax.block_until_ready(out)

    ref = reference_forward(np.asarray(x, np.float64), theta)
    np.testing.assert_allclose(np.asarray(out), ref, rtol=2e-4, atol=2e-4)
    print("KERNEL_OK")
</pallas_src>

<mosaic_0001>
module attributes {stable_mosaic.version = 11 : i64} {
  func.func @qdqn_kernel(%arg0: i32, %arg1: memref<4x128xf32, #tpu.memory_space<vmem>>, %arg2: memref<32x16xf32, #tpu.memory_space<vmem>>, %arg3: memref<4x32xf32, #tpu.memory_space<vmem>>, %arg4: memref<4x128xf32, #tpu.memory_space<vmem>>) attributes {dimension_semantics = [#tpu.dimension_semantics<parallel>], iteration_bounds = array<i64: 1>, scalar_prefetch = 0 : i64, scratch_operands = 0 : i64, tpu.core_type = #tpu.core_type<tc>, window_params = [{transform_indices = @transform_0, window_bounds = array<i64: 4, 128>}, {pipeline_mode = #tpu.pipeline_mode<synchronous>, transform_indices = @transform_1, window_bounds = array<i64: 32, 16>}, {pipeline_mode = #tpu.pipeline_mode<synchronous>, transform_indices = @transform_2, window_bounds = array<i64: 4, 32>}, {transform_indices = @transform_3, window_bounds = array<i64: 4, 128>}]} {
    %c0 = arith.constant 0 : index
    %c0_0 = arith.constant 0 : index
    %0 = vector.load %arg1[%c0, %c0_0] : memref<4x128xf32, #tpu.memory_space<vmem>>, vector<4x128xf32>
    %cst = arith.constant 1.57079637 : f32
    %1 = vector.broadcast %cst : f32 to vector<4x128xf32>
    %2 = arith.mulf %0, %1 : vector<4x128xf32>
    %3 = math.cos %2 : vector<4x128xf32>
    %4 = math.sin %2 : vector<4x128xf32>
    %5 = tpu.iota {dimensions = array<i32: 0>} : vector<16x128xi32>
    %cst_1 = arith.constant 1.000000e+00 : f32
    %6 = vector.broadcast %cst_1 : f32 to vector<16x128xf32>
    %c3_i32 = arith.constant 3 : i32
    %7 = vector.broadcast %c3_i32 : i32 to vector<16x128xi32>
    %8 = arith.shrsi %5, %7 : vector<16x128xi32>
    %c1_i32 = arith.constant 1 : i32
    %9 = vector.broadcast %c1_i32 : i32 to vector<16x128xi32>
    %10 = arith.andi %8, %9 : vector<16x128xi32>
    %c0_i32 = arith.constant 0 : i32
    %11 = vector.broadcast %c0_i32 : i32 to vector<16x128xi32>
    %12 = arith.cmpi eq, %10, %11 : vector<16x128xi32>
    %13 = vector.extract_strided_slice %3 {offsets = [0, 0], sizes = [1, 128], strides = [1, 1]} : vector<4x128xf32> to vector<1x128xf32>
    %14 = vector.extract_strided_slice %4 {offsets = [0, 0], sizes = [1, 128], strides = [1, 1]} : vector<4x128xf32> to vector<1x128xf32>
    %15 = vector.shape_cast %13 : vector<1x128xf32> to vector<1x128xf32>
    %16 = vector.broadcast %15 : vector<1x128xf32> to vector<16x128xf32>
    %17 = vector.shape_cast %14 : vector<1x128xf32> to vector<1x128xf32>
    %18 = vector.broadcast %17 : vector<1x128xf32> to vector<16x128xf32>
    %19 = arith.select %12, %16, %18 : vector<16x128xi1>, vector<16x128xf32>
    %20 = arith.mulf %6, %19 : vector<16x128xf32>
    %c2_i32 = arith.constant 2 : i32
    %21 = vector.broadcast %c2_i32 : i32 to vector<16x128xi32>
    %22 = arith.shrsi %5, %21 : vector<16x128xi32>
    %c1_i32_2 = arith.constant 1 : i32
    %23 = vector.broadcast %c1_i32_2 : i32 to vector<16x128xi32>
    %24 = arith.andi %22, %23 : vector<16x128xi32>
    %c0_i32_3 = arith.constant 0 : i32
    %25 = vector.broadcast %c0_i32_3 : i32 to vector<16x128xi32>
    %26 = arith.cmpi eq, %24, %25 : vector<16x128xi32>
    %27 = vector.extract_strided_slice %3 {offsets = [1, 0], sizes = [1, 128], strides = [1, 1]} : vector<4x128xf32> to vector<1x128xf32>
    %28 = vector.extract_strided_slice %4 {offsets = [1, 0], sizes = [1, 128], strides = [1, 1]} : vector<4x128xf32> to vector<1x128xf32>
    %29 = vector.shape_cast %27 : vector<1x128xf32> to vector<1x128xf32>
    %30 = vector.broadcast %29 : vector<1x128xf32> to vector<16x128xf32>
    %31 = vector.shape_cast %28 : vector<1x128xf32> to vector<1x128xf32>
    %32 = vector.broadcast %31 : vector<1x128xf32> to vector<16x128xf32>
    %33 = arith.select %26, %30, %32 : vector<16x128xi1>, vector<16x128xf32>
    %34 = arith.mulf %20, %33 : vector<16x128xf32>
    %c1_i32_4 = arith.constant 1 : i32
    %35 = vector.broadcast %c1_i32_4 : i32 to vector<16x128xi32>
    %36 = arith.shrsi %5, %35 : vector<16x128xi32>
    %c1_i32_5 = arith.constant 1 : i32
    %37 = vector.broadcast %c1_i32_5 : i32 to vector<16x128xi32>
    %38 = arith.andi %36, %37 : vector<16x128xi32>
    %c0_i32_6 = arith.constant 0 : i32
    %39 = vector.broadcast %c0_i32_6 : i32 to vector<16x128xi32>
    %40 = arith.cmpi eq, %38, %39 : vector<16x128xi32>
    %41 = vector.extract_strided_slice %3 {offsets = [2, 0], sizes = [1, 128], strides = [1, 1]} : vector<4x128xf32> to vector<1x128xf32>
    %42 = vector.extract_strided_slice %4 {offsets = [2, 0], sizes = [1, 128], strides = [1, 1]} : vector<4x128xf32> to vector<1x128xf32>
    %43 = vector.shape_cast %41 : vector<1x128xf32> to vector<1x128xf32>
    %44 = vector.broadcast %43 : vector<1x128xf32> to vector<16x128xf32>
    %45 = vector.shape_cast %42 : vector<1x128xf32> to vector<1x128xf32>
    %46 = vector.broadcast %45 : vector<1x128xf32> to vector<16x128xf32>
    %47 = arith.select %40, %44, %46 : vector<16x128xi1>, vector<16x128xf32>
    %48 = arith.mulf %34, %47 : vector<16x128xf32>
    %c0_i32_7 = arith.constant 0 : i32
    %49 = vector.broadcast %c0_i32_7 : i32 to vector<16x128xi32>
    %50 = arith.shrsi %5, %49 : vector<16x128xi32>
    %c1_i32_8 = arith.constant 1 : i32
    %51 = vector.broadcast %c1_i32_8 : i32 to vector<16x128xi32>
    %52 = arith.andi %50, %51 : vector<16x128xi32>
    %c0_i32_9 = arith.constant 0 : i32
    %53 = vector.broadcast %c0_i32_9 : i32 to vector<16x128xi32>
    %54 = arith.cmpi eq, %52, %53 : vector<16x128xi32>
    %55 = vector.extract_strided_slice %3 {offsets = [3, 0], sizes = [1, 128], strides = [1, 1]} : vector<4x128xf32> to vector<1x128xf32>
    %56 = vector.extract_strided_slice %4 {offsets = [3, 0], sizes = [1, 128], strides = [1, 1]} : vector<4x128xf32> to vector<1x128xf32>
    %57 = vector.shape_cast %55 : vector<1x128xf32> to vector<1x128xf32>
    %58 = vector.broadcast %57 : vector<1x128xf32> to vector<16x128xf32>
    %59 = vector.shape_cast %56 : vector<1x128xf32> to vector<1x128xf32>
    %60 = vector.broadcast %59 : vector<1x128xf32> to vector<16x128xf32>
    %61 = arith.select %54, %58, %60 : vector<16x128xi1>, vector<16x128xf32>
    %62 = arith.mulf %48, %61 : vector<16x128xf32>
    %c0_10 = arith.constant 0 : index
    %c0_11 = arith.constant 0 : index
    %63 = vector.load %arg2[%c0_10, %c0_11] : memref<32x16xf32, #tpu.memory_space<vmem>>, vector<32x16xf32>
    %cst_12 = arith.constant dense<0.000000e+00> : vector<32x128xf32>
    %64 = tpu.matmul %63, %62, %cst_12 {dimension_numbers = #tpu.dot_dimension_numbers<[1], [0], [0], [1], [0, 0, 1, 1], [], []>} : vector<32x16xf32>, vector<16x128xf32>, vector<32x128xf32> -> vector<32x128xf32>
    %65 = arith.mulf %64, %64 : vector<32x128xf32>
    %c0_13 = arith.constant 0 : index
    %c0_14 = arith.constant 0 : index
    %66 = vector.load %arg3[%c0_13, %c0_14] : memref<4x32xf32, #tpu.memory_space<vmem>>, vector<4x32xf32>
    %cst_15 = arith.constant dense<0.000000e+00> : vector<4x128xf32>
    %67 = tpu.matmul %66, %65, %cst_15 {dimension_numbers = #tpu.dot_dimension_numbers<[1], [0], [0], [1], [0, 0, 1, 1], [], []>} : vector<4x32xf32>, vector<32x128xf32>, vector<4x128xf32> -> vector<4x128xf32>
    %c0_16 = arith.constant 0 : index
    %c0_17 = arith.constant 0 : index
    %68 = vector.load %arg4[%c0_16, %c0_17] : memref<4x128xf32, #tpu.memory_space<vmem>>, vector<4x128xf32>
    tpu.vector_store %arg4[%c0_16, %c0_17], %67 {strides = array<i32>} : memref<4x128xf32, #tpu.memory_space<vmem>>, vector<4x128xf32>,
    return
  }
  func.func @transform_0(%arg0: i32) -> (i32, i32) {
    %c0_i32 = arith.constant 0 : i32
    %c0_i32_0 = arith.constant 0 : i32
    return %c0_i32, %arg0 : i32, i32
  }
  func.func @transform_1(%arg0: i32) -> (i32, i32) {
    %c0_i32 = arith.constant 0 : i32
    %c0_i32_0 = arith.constant 0 : i32
    %c0_i32_1 = arith.constant 0 : i32
    return %c0_i32, %c0_i32_0 : i32, i32
  }
  func.func @transform_2(%arg0: i32) -> (i32, i32) {
    %c0_i32 = arith.constant 0 : i32
    %c0_i32_0 = arith.constant 0 : i32
    %c0_i32_1 = arith.constant 0 : i32
    return %c0_i32, %c0_i32_0 : i32, i32
  }
  func.func @transform_3(%arg0: i32) -> (i32, i32) {
    %c0_i32 = arith.constant 0 : i32
    %c0_i32_0 = arith.constant 0 : i32
    return %c0_i32, %arg0 : i32, i32
  }
}

</mosaic_0001>

<bundles_post_ra>
// kernel: _qdqn_call.1
= control target key start
LH: loop header
LB: loop body
LE: loop exit
PB: predicated region body
PF: predicated region fallthrough
CT: control target
= control target key end

     0   :  { %vm298_vm0 = vcmask 130048   ;;  %v552_v14 = vmov 683565275   ;;  %v553_v16 = vmov 2475754826   ;;  %s660_s0 = inlined_call_operand.vmem [shape: f32[4,128], index: 0, kind: input, shape index: {}]   ;;  %s661_s1 = inlined_call_operand.vmem [shape: f32[32,16], index: 1, kind: input, shape index: {}]   ;;  %s662_s2 = inlined_call_operand.vmem [shape: f32[4,32], index: 2, kind: input, shape index: {}]   ;;  %s663_s3 = inlined_call_operand.vmem [shape: f32[4,128], index: 3, kind: output, shape index: {}]  }
   0x1   :  { %v14_v0 = vld [vmem:[%s660_s0] sm:$0xf]  ;;  %v554_v18 = vmov 2131351028   ;;  %v555_v20 = vmov 2102212464  }
   0x2   :  { %v584_v1 = vmul.f32 1.5707964, %v14_v0  ;;  %v294_v2 = vld [vmem:[%s661_s1] sm:$0xff]  ;;  %v556_v22 = vmov 920167782  }
   0x3   :  { %508 = vmatprep.mubr.msk.f32.mxu0 %vm298_vm0, %v294_v2  ;;  %v557_v29 = vmov 1326507024  }
   0x4   :  { %v19_v3 = vand.u32 2139095040, %v584_v1  ;;  %v16_v5 = vand.u32 2147483647, %v584_v1  ;;  %vm18_vm8 = vcmp.lt.s32.totalorder %v584_v1, 0  ;;  %vm108_vm10 = vweird.f32 %v584_v1 }
   0x6   :  { %v20_v4 = vshrl.u32 %v19_v3, 23  ;;  %v23_v8 = vand.u32 8388607, %v16_v5  ;;  %vm17_vm9 = vcmp.le.f32.partialorder %v16_v5, 0.7853982 }
   0x8   :  { %v480_v6 = vadd.s32 4294967169, %v20_v4  ;;  %v24_v11 = vor.u32 8388608, %v23_v8 }
   0xa   :  { %v26_v7 = vadd.s32 1, %v480_v6  ;;  %v64_v31 = vshll.u32 %v24_v11, 8 }
   0xc   :  { %vm27_vm1 = vcmp.gt.s32.totalorder %v26_v7, 0 }
   0xd   :  { %v28_v9 = vsel %vm27_vm1, %v26_v7, 0 }
   0xe   :  { %v30_v10 = vand.u32 31, %v28_v9  ;;  %v29_v12 = vshrl.u32 %v28_v9, 5 }
  0x10   :  { %v31_v13 = vsub.s32 32, %v30_v10  ;;  %v33_v15 = vshll.u32 %v552_v14, %v30_v10  ;;  %v36_v17 = vshll.u32 %v553_v16, %v30_v10  ;;  %v39_v19 = vshll.u32 %v554_v18, %v30_v10 }
  0x11   :  { %v42_v21 = vshll.u32 %v555_v20, %v30_v10  ;;  %v45_v23 = vshll.u32 %v556_v22, %v30_v10  ;;  %vm48_vm2 = vcmp.lt.s32.totalorder %v29_v12, 1  ;;  %vm51_vm3 = vcmp.lt.s32.totalorder %v29_v12, 4 }
  0x12   :  { %v32_v24 = vshrl.u32 %v552_v14, %v31_v13  ;;  %v34_v25 = vshrl.u32 %v553_v16, %v31_v13  ;;  %v37_v26 = vshrl.u32 %v554_v18, %v31_v13  ;;  %v40_v27 = vshrl.u32 %v555_v20, %v31_v13 }
  0x13   :  { %v43_v28 = vshrl.u32 %v556_v22, %v31_v13  ;;  %v46_v30 = vshrl.u32 %v557_v29, %v31_v13  ;;  %vm49_vm4 = vcmp.lt.s32.totalorder %v29_v12, 2  ;;  %vm50_vm5 = vcmp.lt.s32.totalorder %v29_v12, 3 }
  0x14   :  { %v35_v32 = vor.u32 %v34_v25, %v33_v15  ;;  %v38_v33 = vor.u32 %v37_v26, %v36_v17  ;;  %v41_v34 = vor.u32 %v40_v27, %v39_v19  ;;  %v223_v16 = vlaneseq }
  0x15   :  { %v44_v35 = vor.u32 %v43_v28, %v42_v21  ;;  %v47_v36 = vor.u32 %v46_v30, %v45_v23 }
  0x16   :  { %v52_v37 = vsel %vm48_vm2, %v32_v24, %v35_v32  ;;  %v53_v38 = vsel %vm51_vm3, %v41_v34, 2102212464  ;;  %v56_v39 = vsel %vm48_vm2, %v35_v32, %v38_v33  ;;  %v60_v40 = vsel %vm48_vm2, %v38_v33, %v41_v34 }
  0x17   :  { %v54_v41 = vsel %vm50_vm5, %v38_v33, %v53_v38  ;;  %v57_v42 = vsel %vm51_vm3, %v44_v35, 920167782  ;;  %v61_v43 = vsel %vm51_vm3, %v47_v36, 1326507024  ;;  %v607_v20 = vshrl.u32 %v223_v16, 7 }
  0x18   :  { %v58_v44 = vsel %vm50_vm5, %v41_v34, %v57_v42  ;;  %v62_v45 = vsel %vm50_vm5, %v44_v35, %v61_v43  ;;  %v55_v46 = vsel %vm49_vm4, %v52_v37, %v54_v41 }
  0x19   :  { %v59_v47 = vsel %vm49_vm4, %v56_v39, %v58_v44  ;;  %v63_v48 = vsel %vm49_vm4, %v60_v40, %v62_v45  ;;  %v71_v53 = vmul.u32 %v64_v31, %v55_v46  ;;  %v225_v24 = vadd.s32 8, %v607_v20 }
  0x1a   :  { %v594_v49 = vmul.u32.u64.low %v64_v31, %v63_v48  ;;  %v595_v50 = vmul.u32.u64.high %v64_v31, %v63_v48, %v594_v49  ;;  %v597_v51 = vmul.u32.u64.low %v64_v31, %v59_v47  ;;  %v598_v52 = vmul.u32.u64.high %v64_v31, %v59_v47, %v597_v51 }
  0x1b   :  { %v226_v25 = vshra.s32 %v607_v20, 3  ;;  %v242_v26 = vshra.s32 %v607_v20, 2  ;;  %v227_v28 = vshra.s32 %v225_v24, 3  ;;  %v243_v5 = vshra.s32 %v225_v24, 2 }
  0x1c   :  { %vm73_vm6 = vc.u32 %v595_v50, %v597_v51  ;;  %v74_v54 = vadd.s32 1, %v598_v52  ;;  %v72_v2 = vadd.s32 %v597_v51, %v595_v50  ;;  %v260_v33 = vshra.s32 %v607_v20, 1 }
  0x1d   :  { %v228_v29 = vand.u32 1, %v226_v25  ;;  %v244_v30 = vand.u32 1, %v242_v26  ;;  %v261_v34 = vshra.s32 %v225_v24, 1  ;;  %v234_v35 = vsub.s32 0, %v607_v20 }
  0x1e   :  { %v75_v55 = vsel %vm73_vm6, %v74_v54, %v598_v52  ;;  %v250_v36 = vsub.s32 1, %v607_v20  ;;  %v229_v37 = vand.u32 1, %v227_v28  ;;  %v245_v38 = vand.u32 1, %v243_v5 }
  0x1f   :  { %v76_v56 = vadd.s32 %v75_v55, %v71_v53  ;;  %vm230_vm11 = vcmp.eq.s32.totalorder %v228_v29, 0  ;;  %vm246_vm12 = vcmp.eq.s32.totalorder %v244_v30, 0  ;;  %v262_v40 = vand.u32 1, %v260_v33  ;;  %v400_v33 = vld [vmem:[%s662_s2] sm:$0xf] }
  0x20   :  { %v263_v41 = vand.u32 1, %v261_v34  ;;  %v278_v44 = vand.u32 1, %v607_v20  ;;  %v279_v46 = vand.u32 1, %v225_v24  ;;  %vm231_vm4 = vcmp.eq.s32.totalorder %v229_v37, 0 }
  0x21   :  { %v77_v57 = vadd.s32 536870912, %v76_v56  ;;  %vm247_vm5 = vcmp.eq.s32.totalorder %v245_v38, 0  ;;  %v268_v51 = vsub.s32 2, %v607_v20  ;;  %v284_v52 = vsub.s32 3, %v607_v20  ;;  %v296_v20 = vld [vmem:[%s661_s1 + $0x10] sm:$0xff] }
  0x22   :  { %vm264_vm6 = vcmp.eq.s32.totalorder %v262_v40, 0 }
  0x23   :  { %v78_v58 = vshrl.u32 %v77_v57, 30 }
  0x25   :  { %v79_v59 = vshll.u32 %v78_v58, 30  ;;  %v102_v15 = vsub.s32 4, %v78_v58 }
  0x27   :  { %v80_v60 = vsub.s32 %v76_v56, %v79_v59  ;;  %v103_v19 = vsel %vm18_vm8, %v102_v15, %v78_v58 }
  0x28   :  { %v105_v23 = vsel %vm17_vm9, 0, %v103_v19  ;;  %v295_v19 = vld [vmem:[%s661_s1 + $0x8] sm:$0xff] }
  0x29   :  { %v82_v61 = vsub.s32 0, %v80_v60  ;;  %v212_v27 = vadd.s32 3, %v105_v23  ;;  %v109_v31 = vand.u32 3, %v105_v23  ;;  %v560_v23 = vmov 0.0  }
  0x2b   :  { %v481_v62 = vmin.u32 %v82_v61, %v80_v60  ;;  %v213_v32 = vand.u32 3, %v212_v27  ;;  %vm114_vm13 = vcmp.eq.s32.totalorder %v109_v31, 2  ;;  %vm111_vm15 = vcmp.eq.s32.totalorder %v109_v31, 0 }
  0x2c   :  { %vm110_vm2 = vcmp.lt.s32.totalorder %v109_v31, 2 }
  0x2d   :  { %v84_v63 = vclz %v481_v62  ;;  %vm218_vm14 = vcmp.eq.s32.totalorder %v213_v32, 2  ;;  %vm215_vm1 = vcmp.eq.s32.totalorder %v213_v32, 0  ;;  %vm214_vm3 = vcmp.lt.s32.totalorder %v213_v32, 2 }
  0x2f   :  { %v482_v0 = vadd.s32 4294967294, %v84_v63 }
  0x31   :  { %vm483_vm7 = vcmp.lt.s32.totalorder %v482_v0, 0 }
  0x32   :  { %v87_v3 = vsel %vm483_vm7, 0, %v482_v0  ;;  %vm265_vm7 = vcmp.eq.s32.totalorder %v263_v41, 0 }
  0x33   :  { %v88_v4 = vsub.s32 32, %v87_v3  ;;  %v89_v6 = vshll.u32 %v80_v60, %v87_v3  ;;  %v92_v7 = vsub.s32 4294967266, %v87_v3 }
  0x35   :  { %v90_v8 = vshrl.u32 %v72_v2, %v88_v4  ;;  %v93_v9 = vadd.s32 127, %v92_v7 }
  0x37   :  { %v91_v10 = vor.u32 %v90_v8, %v89_v6  ;;  %v94_v11 = vshll.u32 %v93_v9, 23 }
  0x39   :  { %v95_v12 = vor.u32 4788187, %v94_v11  ;;  %v98_v13 = vcvt.s32.f32 %v91_v10 }
  0x3b   :  { %v96_v14 = vand.u32 2147483647, %v95_v12 }
  0x3d   :  { %v99_v17 = vmul.f32 %v98_v13, %v96_v14 }
  0x3f   :  { %v100_v18 = vxor.u32 2147483648, %v99_v17 }
  0x41   :  { %v101_v21 = vsel %vm18_vm8, %v100_v18, %v99_v17  ;;  %vm624_vm8 = vcmp.eq.s32.totalorder %v278_v44, 0 }
  0x42   :  { %v104_v22 = vsel %vm17_vm9, %v584_v1, %v101_v21  ;;  %vm628_vm9 = vcmp.eq.s32.totalorder %v279_v46, 0  ;;  %v297_v21 = vld [vmem:[%s661_s1 + $0x18] sm:$0xff] }
  0x43   :  { %548 = vcosq.f32 %v104_v22 }
  0x44   :  { %550 = vsinq.f32 %v104_v22  ;;  %v558_v22 = vmov 0.0|0.0  }
  0x45   :  { %529 = vmatprep.subr.bf16.mxu1 %v558_v22 }
  0x4d   :  { %v549_v39 = vpop.eup %548 }
  0x4e   :  { %v551_v42 = vpop.eup %550  ;;  %v115_v43 = vxor.u32 2147483648, %v549_v39 }
  0x4f   :  { %v112_v45 = vxor.u32 2147483648, %v551_v42 }
  0x50   :  { %v116_v47 = vsel %vm114_vm13, %v115_v43, %v551_v42  ;;  %v220_v48 = vsel %vm218_vm14, %v115_v43, %v551_v42 }
  0x51   :  { %v113_v49 = vsel %vm111_vm15, %v549_v39, %v112_v45  ;;  %v217_v50 = vsel %vm215_vm1, %v549_v39, %v112_v45 }
  0x52   :  { %v117_v53 = vsel %vm110_vm2, %v113_v49, %v116_v47  ;;  %v221_v54 = vsel %vm214_vm3, %v217_v50, %v220_v48 }
  0x53   :  { %v118_v55 = vsel %vm108_vm10, nan, %v117_v53  ;;  %v222_v56 = vsel %vm108_vm10, nan, %v221_v54  ;;  %vm559_vm10 = vmmov 0  }
  0x54   :  { %v235_v59 = vrot.slane %v118_v55, %v234_v35  ;;  %v239_v60 = vrot.slane %v222_v56, %v234_v35  ;;  %v251_v61 = vrot.slane %v118_v55, %v250_v36  ;;  %v255_v62 = vrot.slane %v222_v56, %v250_v36  ;;  %522 = vmatprep.mubr.msk.f32.mxu1 %vm559_vm10, %v560_v23 }
  0x55   :  { %v269_v63 = vrot.slane %v118_v55, %v268_v51  ;;  %v273_v0 = vrot.slane %v222_v56, %v268_v51  ;;  %v285_v2 = vrot.slane %v118_v55, %v284_v52  ;;  %v289_v3 = vrot.slane %v222_v56, %v284_v52 }
  0x56   :  { %v240_v4 = vsel %vm230_vm11, %v235_v59, %v239_v60  ;;  %v241_v1 = vsel %vm231_vm4, %v235_v59, %v239_v60  ;;  %v256_v6 = vsel %vm246_vm12, %v251_v61, %v255_v62  ;;  %v257_v7 = vsel %vm247_vm5, %v251_v61, %v255_v62 }
  0x57   :  { %v258_v8 = vmul.f32 %v256_v6, %v240_v4  ;;  %v259_v9 = vmul.f32 %v257_v7, %v241_v1  ;;  %v274_v10 = vsel %vm264_vm6, %v269_v63, %v273_v0  ;;  %v275_v11 = vsel %vm265_vm7, %v269_v63, %v273_v0 }
  0x58   :  { %v290_v12 = vsel %vm624_vm8, %v285_v2, %v289_v3  ;;  %v291_v13 = vsel %vm628_vm9, %v285_v2, %v289_v3 }
  0x59   :  { %v276_v14 = vmul.f32 %v274_v10, %v258_v8  ;;  %v277_v15 = vmul.f32 %v275_v11, %v259_v9 }
  0x5b   :  { %v292_v16 = vmul.f32 %v290_v12, %v276_v14  ;;  %v293_v17 = vmul.f32 %v291_v13, %v277_v15 }
  0x5d   :  { %v525_v18 = vpack.c.bf16 %v293_v17, %v292_v16 }
  0x5f   :  { %526 = vmatprep.subr.bf16.mxu0 %v525_v18 }
  0x60   :  { %528 = vmatpush3.bf16.msra.mxu0 %v525_v18 }
  0x63   :  { %509 = vmatmul.mubr.msk.f32.vlgmr.msra.gmra.mrb[0].mxu0 %vm298_vm0, %v295_v19 }
  0x64   :  { %511 = vmatprep.mubr.msk.f32.mxu0 %vm298_vm0, %v296_v20 }
  0x67   :  { %512 = vmatmul.mubr.msk.f32.gmra.mrb[2].mxu0 %vm298_vm0, %v297_v21  ;;  %vm401_vm0 = vcmask 261120  }
 0x136   :  { %v510_v24 = vpop.f32.mrb[0].mxu0 }
 0x137   :  { %v397_v25 = vmul.f32 %v510_v24, %v510_v24  ;;  %v377_v26 = vpop.f32.mrb[1].mxu0 }
 0x138   :  { %v396_v27 = vmul.f32 %v377_v26, %v377_v26 }
 0x13a   :  { %v513_v28 = vpop.f32.mrb[2].mxu0  ;;  %v530_v29 = vpack.c.bf16 %v397_v25, %v396_v27 }
 0x13b   :  { %v399_v5 = vmul.f32 %v513_v28, %v513_v28  ;;  %v387_v30 = vpop.f32.mrb[3].mxu0 }
 0x13c   :  { %v398_v31 = vmul.f32 %v387_v30, %v387_v30  ;;  %531 = vmatpush3.bf16.msra.mxu1 %v530_v29 }
 0x13d   :  { %532 = vmatprep.subr.bf16.mxu1 %v558_v22 }
 0x13e   :  { %v533_v32 = vpack.c.bf16 %v399_v5, %v398_v31 }
 0x140   :  { %534 = vmatpush3.bf16.msra.mxu1 %v533_v32 }
 0x143   :  { %523 = vmatmul.mubr.msk.f32.vlgmr.msra.gmra.mrb[0].mxu1 %vm401_vm0, %v400_v33 }
 0x216   :  { %v471_v34 = vpop.f32.mrb[0].mxu1 }
 0x217   :  { %475 = vst [vmem:[%s663_s3] sm:$0xf] %v471_v34  ;;  %v524_v35 = vpop.f32.mrb[1].mxu1 }

</bundles_post_ra>
